<compile_context>
chip_gen: v5e
topology: v5e:2x2
jax: 0.10.0
libtpu: 0.0.40
codegen_flags: <defaults>
</compile_context>

<pallas_src>
import jax
import jax.numpy as jnp
from jax.experimental import pallas as pl
from jax.experimental.pallas import tpu as pltpu


# ----------------------------- Pallas kernel ------------------------------ #

def _proj_kernel(x_ref, w_ref, b_ref, o_ref):
    # x_ref: (TM, K)  compute-dtype patch tile
    # w_ref: (K, E)   compute-dtype projection weight (grid-invariant, resident)
    # b_ref: (1, E)   f32 bias row (grid-invariant)
    # o_ref: (TM, E)  output tile in the caller's dtype
    acc = jnp.dot(x_ref[...], w_ref[...], preferred_element_type=jnp.float32)
    o_ref[...] = (acc + b_ref[...]).astype(o_ref.dtype)


def _round_up(x, m):
    return ((x + m - 1) // m) * m


def _patch_project(patches_2d, w_mat, bias, out_dtype, *, max_tm=1024):
    """(M, K) @ (K, E) + bias -> (M, E) on the MXU, f32 accumulation.

    No padding of any operand:
      * K and E blocks use the full array extent (full-dim blocks are exempt from
        the 128-lane divisibility rule), so odd K / small E need no HBM-copying pad.
      * The M grid is pl.cdiv(M, tm); the ragged last block reads OOB garbage rows
        and its OOB output rows are masked on write.  The matmul is row-independent,
        so those rows never contaminate valid output.  (Do NOT add a cross-row
        reduction here later without re-introducing explicit masking.)
    """
    M, K = patches_2d.shape
    E = w_mat.shape[1]
    in_bytes = jnp.dtype(patches_2d.dtype).itemsize
    out_bytes = jnp.dtype(out_dtype).itemsize

    # >=2 grid steps whenever M is large enough so both v7x TensorCores get work;
    # tm stays a multiple of 128 so vregs feeding the MXU are full.
    tm = min(max_tm, _round_up(pl.cdiv(M, 2), 128))

    # VMEM: double-buffered patch/output tiles + (tiny, grid-invariant) weight/bias,
    # also counted double-buffered.  12 MiB budget keeps us inside v5e's 16 MiB scoped
    # default and leaves ample headroom on v7x (32 MiB scoped / 64 MiB physical).
    def vmem_bytes(t):
        return (2 * (t * K * in_bytes + t * E * out_bytes)
                + 2 * (K * E * in_bytes + E * 4))

    budget = 12 << 20
    while tm > 128 and vmem_bytes(tm) > budget:
        tm -= 128

    grid = (pl.cdiv(M, tm),)
    return pl.pallas_call(
        _proj_kernel,
        out_shape=jax.ShapeDtypeStruct((M, E), out_dtype),
        grid_spec=pltpu.PrefetchScalarGridSpec(
            num_scalar_prefetch=0,
            grid=grid,
            in_specs=[
                pl.BlockSpec((tm, K), lambda i: (i, 0)),   # patches tile (ragged last)
                pl.BlockSpec((K, E), lambda i: (0, 0)),    # full weight, resident
                pl.BlockSpec((1, E), lambda i: (0, 0)),    # bias row, resident
            ],
            out_specs=pl.BlockSpec((tm, E), lambda i: (i, 0)),
        ),
        compiler_params=pltpu.CompilerParams(
            dimension_semantics=("parallel",),
            vmem_limit_bytes=int(vmem_bytes(tm)) + (4 << 20),
        ),
    )(patches_2d, w_mat, bias)


# ------------------------------ glue (JAX) -------------------------------- #

def _extract_patches(x, patch_hw, stride_hw):
    """im2col without gather and without a wrapper transpose.

    x: (B, C, H, W) -> (B, HP, WP, C*ph*pw).  The NHWC output spec puts the
    feature dim last, so the previous full-matrix jnp.transpose is gone.  The
    feature ordering is channel-major then (ph, pw), i.e. it matches torch's
    Conv2d weight.reshape(E, C*ph*pw); the conv reference check in __main__
    validates this ordering end to end.
    """
    ph, pw = patch_hw
    sh, sw = stride_hw
    return jax.lax.conv_general_dilated_patches(
        x, filter_shape=(ph, pw), window_strides=(sh, sw), padding="VALID",
        dimension_numbers=("NCHW", "OIHW", "NHWC"))


class PatchEmbedNew:
    """Flexible image-to-patch embedding (Conv2d proj) backed by a Pallas MXU matmul."""

    def __init__(self, img_size=16, patch_size=8, in_chans=4, embed_dim=32,
                 stride=4, key=None, param_dtype=jnp.float32,
                 compute_dtype=jnp.bfloat16):
        to2 = lambda v: (v, v) if isinstance(v, int) else tuple(v)
        self.img_size = to2(img_size)
        self.patch_size = to2(patch_size)
        self.stride = to2(stride)
        self.in_chans = in_chans
        self.embed_dim = embed_dim
        self.compute_dtype = compute_dtype

        ph, pw = self.patch_size
        sh, sw = self.stride
        H, W = self.img_size
        self.patch_hw = ((H - ph) // sh + 1, (W - pw) // sw + 1)
        self.num_patches = self.patch_hw[0] * self.patch_hw[1]

        if key is None:
            key = jax.random.PRNGKey(0)
        kw, kb = jax.random.split(key)
        fan_in = in_chans * ph * pw
        bound = 1.0 / jnp.sqrt(fan_in)
        # PyTorch Conv2d weight layout: (E, C, ph, pw); bias: (E,)
        self.weight = jax.random.uniform(
            kw, (embed_dim, in_chans, ph, pw), param_dtype, minval=-bound, maxval=bound)
        self.bias = jax.random.uniform(
            kb, (embed_dim,), param_dtype, minval=-bound, maxval=bound)

    def __call__(self, x):
        # x: NCHW [B, C, H, W]
        B = x.shape[0]
        out_dtype = x.dtype  # preserve module semantics (torch conv keeps input dtype)
        ph, pw = self.patch_size
        K = self.in_chans * ph * pw
        M = B * self.num_patches

        # compute_dtype (default bf16) halves HBM traffic for the duplicated patch
        # matrix; the MXU still accumulates in f32 inside the kernel.
        patches = _extract_patches(
            x.astype(self.compute_dtype), self.patch_size, self.stride)
        patches_2d = patches.reshape(M, K)                       # free: layout-preserving
        w_mat = self.weight.reshape(self.embed_dim, K).T.astype(self.compute_dtype)  # (K, E)
        b_row = self.bias.reshape(1, self.embed_dim).astype(jnp.float32)             # (1, E)

        out = _patch_project(patches_2d, w_mat, b_row, out_dtype)  # (M, E)
        # flatten(2).transpose(1,2) in PyTorch == (B, num_patches, embed_dim) here.
        return out.reshape(B, self.num_patches, self.embed_dim)


# --------------------------------- main ------------------------------------ #

if __name__ == "__main__":
    key = jax.random.PRNGKey(0)
    k_x, k_p = jax.random.split(key)

    B, C, H, W = 2, 4, 16, 16
    embed_dim = 32
    patch_size = 8
    stride = 4

    x = jax.random.normal(k_x, (B, C, H, W), jnp.float32)

    mod = PatchEmbedNew(img_size=H, patch_size=patch_size, in_chans=C,
                        embed_dim=embed_dim, stride=stride, key=k_p)

    out = jax.jit(lambda xx: mod(xx))(x)
    out = jax.block_until_ready(out)

    # Reference: plain-JAX f32 conv (matches torch Conv2d NCHW/OIHW semantics).
    ref = jax.lax.conv_general_dilated(
        x, mod.weight, window_strides=(stride, stride), padding="VALID",
        dimension_numbers=("NCHW", "OIHW", "NCHW"))
    ref = ref + mod.bias.reshape(1, embed_dim, 1, 1)
    ref = ref.reshape(B, embed_dim, -1).transpose(0, 2, 1)

    assert out.shape == (B, mod.num_patches, embed_dim), out.shape
    # bf16 compute with f32 accumulation -> relaxed tolerance vs the f32 reference.
    assert jnp.allclose(out, ref, atol=2e-2, rtol=2e-2), "mismatch vs conv reference"

    print("KERNEL_OK")
</pallas_src>

<mosaic_0001>
module attributes {stable_mosaic.version = 11 : i64} {
  func.func @_proj_kernel(%arg0: i32, %arg1: memref<128x256xbf16, #tpu.memory_space<vmem>>, %arg2: memref<256x32xbf16, #tpu.memory_space<vmem>>, %arg3: memref<1x32xf32, #tpu.memory_space<vmem>>, %arg4: memref<128x32xf32, #tpu.memory_space<vmem>>) attributes {dimension_semantics = [#tpu.dimension_semantics<parallel>], iteration_bounds = array<i64: 1>, scalar_prefetch = 0 : i64, scratch_operands = 0 : i64, tpu.core_type = #tpu.core_type<tc>, window_params = [{transform_indices = @transform_0, window_bounds = array<i64: 128, 256>}, {pipeline_mode = #tpu.pipeline_mode<synchronous>, transform_indices = @transform_1, window_bounds = array<i64: 256, 32>}, {pipeline_mode = #tpu.pipeline_mode<synchronous>, transform_indices = @transform_2, window_bounds = array<i64: 1, 32>}, {transform_indices = @transform_3, window_bounds = array<i64: 128, 32>}]} {
    %c0 = arith.constant 0 : index
    %c0_0 = arith.constant 0 : index
    %0 = vector.load %arg1[%c0, %c0_0] : memref<128x256xbf16, #tpu.memory_space<vmem>>, vector<128x256xbf16>
    %c0_1 = arith.constant 0 : index
    %c0_2 = arith.constant 0 : index
    %1 = vector.load %arg2[%c0_1, %c0_2] : memref<256x32xbf16, #tpu.memory_space<vmem>>, vector<256x32xbf16>
    %cst = arith.constant dense<0.000000e+00> : vector<128x32xf32>
    %2 = tpu.matmul %0, %1, %cst {dimension_numbers = #tpu.dot_dimension_numbers<[1], [0], [0], [1], [0, 0, 1, 1], [], []>} : vector<128x256xbf16>, vector<256x32xbf16>, vector<128x32xf32> -> vector<128x32xf32>
    %c0_3 = arith.constant 0 : index
    %c0_4 = arith.constant 0 : index
    %3 = vector.load %arg3[%c0_3, %c0_4] : memref<1x32xf32, #tpu.memory_space<vmem>>, vector<1x32xf32>
    %4 = vector.broadcast %3 : vector<1x32xf32> to vector<128x32xf32>
    %5 = arith.addf %2, %4 : vector<128x32xf32>
    %c0_5 = arith.constant 0 : index
    %c0_6 = arith.constant 0 : index
    %6 = vector.load %arg4[%c0_5, %c0_6] : memref<128x32xf32, #tpu.memory_space<vmem>>, vector<128x32xf32>
    tpu.vector_store %arg4[%c0_5, %c0_6], %5 {strides = array<i32>} : memref<128x32xf32, #tpu.memory_space<vmem>>, vector<128x32xf32>,
    return
  }
  func.func @transform_0(%arg0: i32) -> (i32, i32) {
    %c0_i32 = arith.constant 0 : i32
    %c0_i32_0 = arith.constant 0 : i32
    return %arg0, %c0_i32 : i32, i32
  }
  func.func @transform_1(%arg0: i32) -> (i32, i32) {
    %c0_i32 = arith.constant 0 : i32
    %c0_i32_0 = arith.constant 0 : i32
    %c0_i32_1 = arith.constant 0 : i32
    return %c0_i32, %c0_i32_0 : i32, i32
  }
  func.func @transform_2(%arg0: i32) -> (i32, i32) {
    %c0_i32 = arith.constant 0 : i32
    %c0_i32_0 = arith.constant 0 : i32
    %c0_i32_1 = arith.constant 0 : i32
    return %c0_i32, %c0_i32_0 : i32, i32
  }
  func.func @transform_3(%arg0: i32) -> (i32, i32) {
    %c0_i32 = arith.constant 0 : i32
    %c0_i32_0 = arith.constant 0 : i32
    return %arg0, %c0_i32 : i32, i32
  }
}

</mosaic_0001>

<bundles_post_ra>
// kernel: _lambda_.1
= control target key start
LH: loop header
LB: loop body
LE: loop exit
PB: predicated region body
PF: predicated region fallthrough
CT: control target
= control target key end

     0   :  { %vm340_vm0 = vcmask 261120   ;;  %s762_s0 = inlined_call_operand.vmem [shape: bf16[18,256], index: 0, kind: input, shape index: {}]   ;;  %s763_s1 = inlined_call_operand.vmem [shape: bf16[256,32], index: 1, kind: input, shape index: {}]   ;;  %s764_s2 = inlined_call_operand.vmem [shape: f32[1,32], index: 2, kind: input, shape index: {}]   ;;  %s765_s3 = inlined_call_operand.vmem [shape: f32[18,32], index: 3, kind: output, shape index: {}]  }
   0x1   :  { %v557_v0 = vld [vmem:[%s763_s1 + $0x38] sm:$0xff]  ;;  %v556_v2 = vld [vmem:[%s763_s1 + $0x30] sm:$0xff]  ;;  %v555_v4 = vld [vmem:[%s763_s1 + $0x28] sm:$0xff] }
   0x2   :  { %v565_v1 = vld [vmem:[%s763_s1 + $0x78] sm:$0xff]  ;;  %242 = vmatpush.bf16.msra.mxu0 %v557_v0  ;;  %566 = vmatpush.bf16.msra.mxu2 %v557_v0  ;;  %v564_v3 = vld [vmem:[%s763_s1 + $0x70] sm:$0xff]  ;;  %v563_v5 = vld [vmem:[%s763_s1 + $0x68] sm:$0xff] }
   0x3   :  { %291 = vmatpush.bf16.msra.mxu1 %v565_v1  ;;  %574 = vmatpush.bf16.msra.mxu3 %v565_v1  ;;  %v554_v6 = vld [vmem:[%s763_s1 + $0x20] sm:$0xff]  ;;  %v553_v8 = vld [vmem:[%s763_s1 + $0x18] sm:$0xff]  ;;  %v552_v10 = vld [vmem:[%s763_s1 + $0x10] sm:$0xff] }
   0x4   :  { %v562_v7 = vld [vmem:[%s763_s1 + $0x60] sm:$0xff]  ;;  %v561_v9 = vld [vmem:[%s763_s1 + $0x58] sm:$0xff]  ;;  %v560_v11 = vld [vmem:[%s763_s1 + $0x50] sm:$0xff] }
   0x5   :  { %v551_v12 = vld [vmem:[%s763_s1 + $0x8] sm:$0xff]  ;;  %v550_v14 = vld [vmem:[%s763_s1] sm:$0xff]  ;;  %v416_v28 = vld [vmem:[%s762_s0 + $0x10] sm:$0xf] }
   0x6   :  { %243 = vmatpush.bf16.msra.mxu0 %v556_v2  ;;  %567 = vmatpush.bf16.msra.mxu2 %v556_v2  ;;  %v559_v13 = vld [vmem:[%s763_s1 + $0x48] sm:$0xff]  ;;  %v558_v15 = vld [vmem:[%s763_s1 + $0x40] sm:$0xff]  ;;  %v537_v29 = vld [vmem:[%s762_s0 + $0x14] sm:$0xf0] }
   0x7   :  { %292 = vmatpush.bf16.msra.mxu1 %v564_v3  ;;  %575 = vmatpush.bf16.msra.mxu3 %v564_v3  ;;  %v408_v16 = vld [vmem:[%s762_s0] sm:$0xf]  ;;  %v535_v17 = vld [vmem:[%s762_s0 + $0x4] sm:$0xf0]  ;;  %v534_v20 = vld [vmem:[%s762_s0 + $0x4] sm:$0xf]  ;;  %v417_v36 = vor.u32 %v537_v29, %v416_v28 }
   0x8   :  { %v440_v18 = vld [vmem:[%s762_s0 + $0x40] sm:$0xf]  ;;  %v543_v19 = vld [vmem:[%s762_s0 + $0x44] sm:$0xf0]  ;;  %v410_v21 = vld [vmem:[%s762_s0 + $0x8] sm:$0xf0]  ;;  %v409_v24 = vor.u32 %v535_v17, %v408_v16 }
   0x9   :  { %v542_v22 = vld [vmem:[%s762_s0 + $0x44] sm:$0xf]  ;;  %v442_v23 = vld [vmem:[%s762_s0 + $0x48] sm:$0xf0]  ;;  %v441_v25 = vor.u32 %v543_v19, %v440_v18  ;;  %v413_v26 = vor.u32 %v534_v20, %v410_v21  ;;  %v448_v30 = vld [vmem:[%s762_s0 + $0x50] sm:$0xf] }
   0xa   :  { %244 = vmatpush.bf16.msra.mxu0 %v555_v4  ;;  %568 = vmatpush.bf16.msra.mxu2 %v555_v4  ;;  %v445_v27 = vor.u32 %v542_v22, %v442_v23  ;;  %v545_v31 = vld [vmem:[%s762_s0 + $0x54] sm:$0xf0]  ;;  %v536_v32 = vld [vmem:[%s762_s0 + $0x14] sm:$0xf]  ;;  %v418_v33 = vld [vmem:[%s762_s0 + $0x18] sm:$0xf0] }
   0xb   :  { %293 = vmatpush.bf16.msra.mxu1 %v563_v5  ;;  %576 = vmatpush.bf16.msra.mxu3 %v563_v5  ;;  %v544_v34 = vld [vmem:[%s762_s0 + $0x54] sm:$0xf]  ;;  %v450_v35 = vld [vmem:[%s762_s0 + $0x58] sm:$0xf0]  ;;  %v449_v37 = vor.u32 %v545_v31, %v448_v30  ;;  %v421_v38 = vor.u32 %v536_v32, %v418_v33  ;;  %v424_v40 = vld [vmem:[%s762_s0 + $0x20] sm:$0xf] }
   0xc   :  { %v453_v39 = vor.u32 %v544_v34, %v450_v35  ;;  %v539_v41 = vld [vmem:[%s762_s0 + $0x24] sm:$0xf0]  ;;  %v456_v42 = vld [vmem:[%s762_s0 + $0x60] sm:$0xf]  ;;  %v538_v44 = vld [vmem:[%s762_s0 + $0x24] sm:$0xf] }
   0xd   :  { %v547_v43 = vld [vmem:[%s762_s0 + $0x64] sm:$0xf0]  ;;  %v426_v45 = vld [vmem:[%s762_s0 + $0x28] sm:$0xf0]  ;;  %v546_v46 = vld [vmem:[%s762_s0 + $0x64] sm:$0xf]  ;;  %v425_v48 = vor.u32 %v539_v41, %v424_v40 }
   0xe   :  { %245 = vmatpush.bf16.msra.mxu0 %v554_v6  ;;  %569 = vmatpush.bf16.msra.mxu2 %v554_v6  ;;  %v458_v47 = vld [vmem:[%s762_s0 + $0x68] sm:$0xf0]  ;;  %v457_v49 = vor.u32 %v547_v43, %v456_v42  ;;  %v429_v50 = vor.u32 %v538_v44, %v426_v45  ;;  %v432_v52 = vld [vmem:[%s762_s0 + $0x30] sm:$0xf]  ;;  %v541_v53 = vld [vmem:[%s762_s0 + $0x34] sm:$0xf0] }
   0xf   :  { %294 = vmatpush.bf16.msra.mxu1 %v562_v7  ;;  %577 = vmatpush.bf16.msra.mxu3 %v562_v7  ;;  %v461_v51 = vor.u32 %v546_v46, %v458_v47  ;;  %v464_v54 = vld [vmem:[%s762_s0 + $0x70] sm:$0xf]  ;;  %v549_v55 = vld [vmem:[%s762_s0 + $0x74] sm:$0xf0]  ;;  %v540_v56 = vld [vmem:[%s762_s0 + $0x34] sm:$0xf]  ;;  %v433_v60 = vor.u32 %v541_v53, %v432_v52 }
  0x10   :  { %v434_v57 = vld [vmem:[%s762_s0 + $0x38] sm:$0xf0]  ;;  %v548_v58 = vld [vmem:[%s762_s0 + $0x74] sm:$0xf]  ;;  %v465_v61 = vor.u32 %v549_v55, %v464_v54  ;;  %v582_v0 = vld [vmem:[%s764_s2] ss:$0 sm:$0xff] }
  0x11   :  { %v466_v59 = vld [vmem:[%s762_s0 + $0x78] sm:$0xf0]  ;;  %v437_v62 = vor.u32 %v540_v56, %v434_v57 }
  0x12   :  { %246 = vmatpush.bf16.msra.mxu0 %v553_v8  ;;  %570 = vmatpush.bf16.msra.mxu2 %v553_v8  ;;  %v469_v63 = vor.u32 %v548_v58, %v466_v59 }
  0x13   :  { %295 = vmatpush.bf16.msra.mxu1 %v561_v9  ;;  %578 = vmatpush.bf16.msra.mxu3 %v561_v9 }
  0x16   :  { %247 = vmatpush.bf16.msra.mxu0 %v552_v10  ;;  %571 = vmatpush.bf16.msra.mxu2 %v552_v10 }
  0x17   :  { %296 = vmatpush.bf16.msra.mxu1 %v560_v11  ;;  %579 = vmatpush.bf16.msra.mxu3 %v560_v11 }
  0x1a   :  { %248 = vmatpush.bf16.msra.mxu0 %v551_v12  ;;  %572 = vmatpush.bf16.msra.mxu2 %v551_v12 }
  0x1b   :  { %297 = vmatpush.bf16.msra.mxu1 %v559_v13  ;;  %580 = vmatpush.bf16.msra.mxu3 %v559_v13 }
  0x1e   :  { %249 = vmatpush.bf16.msra.mxu0 %v550_v14  ;;  %573 = vmatpush.bf16.msra.mxu2 %v550_v14 }
  0x1f   :  { %298 = vmatpush.bf16.msra.mxu1 %v558_v15  ;;  %581 = vmatpush.bf16.msra.mxu3 %v558_v15 }
  0x21   :  { %250 = vmatmul.bf16.vlgmr.msra.gmra.mxu0 %v409_v24  ;;  %270 = vmatmul.bf16.vlgmr.msra.gmra.mxu2 %v441_v25 }
  0x22   :  { %299 = vmatmul.bf16.vlgmr.msra.gmra.mxu1 %v413_v26  ;;  %319 = vmatmul.bf16.vlgmr.msra.gmra.mxu3 %v445_v27 }
  0x31   :  { %255 = vmatmul.bf16.gmra.mxu0 %v417_v36  ;;  %275 = vmatmul.bf16.gmra.mxu2 %v449_v37 }
  0x32   :  { %304 = vmatmul.bf16.gmra.mxu1 %v421_v38  ;;  %324 = vmatmul.bf16.gmra.mxu3 %v453_v39 }
  0x41   :  { %260 = vmatmul.bf16.gmra.mxu0 %v425_v48  ;;  %280 = vmatmul.bf16.gmra.mxu2 %v457_v49 }
  0x42   :  { %309 = vmatmul.bf16.gmra.mxu1 %v429_v50  ;;  %329 = vmatmul.bf16.gmra.mxu3 %v461_v51 }
  0x51   :  { %265 = vmatmul.bf16.gmra.mxu0 %v433_v60  ;;  %285 = vmatmul.bf16.gmra.mxu2 %v465_v61 }
  0x52   :  { %314 = vmatmul.bf16.gmra.mxu1 %v437_v62  ;;  %334 = vmatmul.bf16.gmra.mxu3 %v469_v63 }
  0x9e   :  { %v251_v1 = vpop.f32.mrf.mxu0 }
  0x9f   :  { %v252_v2 = vadd.f32 %v582_v0, %v251_v1  ;;  %v300_v3 = vpop.f32.mrf.mxu1 }
  0xa1   :  { %v301_v4 = vadd.f32 %v300_v3, %v252_v2 }
  0xa3   :  { %341 = vst.msk [vmem:[#allocation2] sm:$0xff] %vm340_vm0, %v301_v4 }
  0xa4   :  { %v271_v5 = vpop.f32.mrf.mxu2 }
  0xa5   :  { %v320_v6 = vpop.f32.mrf.mxu3 }
  0xa6   :  { %v253_v7 = vpop.f32.mrf.mxu0 }
  0xa7   :  { %v254_v8 = vadd.f32 %v582_v0, %v253_v7  ;;  %v302_v9 = vpop.f32.mrf.mxu1 }
  0xa9   :  { %v303_v10 = vadd.f32 %v302_v9, %v254_v8 }
  0xaa   :  { %v391_v11 = vld [vmem:[#allocation2] sm:$0xff] }
  0xab   :  { %392 = vst [vmem:[%s765_s3] sm:$0xff] %v391_v11 }
  0xac   :  { %342 = vst.msk [vmem:[#allocation2 + $0x8] sm:$0xff] %vm340_vm0, %v303_v10  ;;  %v273_v12 = vpop.f32.mrf.mxu2 }
  0xad   :  { %v322_v13 = vpop.f32.mrf.mxu3 }
  0xae   :  { %v256_v14 = vpop.f32.mrf.mxu0 }
  0xaf   :  { %v257_v15 = vadd.f32 %v582_v0, %v256_v14  ;;  %v305_v16 = vpop.f32.mrf.mxu1 }
  0xb1   :  { %v306_v17 = vadd.f32 %v305_v16, %v257_v15 }
  0xb3   :  { %v393_v18 = vld [vmem:[#allocation2 + $0x8] sm:$0xff]  ;;  %343 = vst.msk [vmem:[#allocation2 + $0x10] sm:$0xff] %vm340_vm0, %v306_v17 }
  0xb4   :  { %394 = vst [vmem:[%s765_s3 + $0x8] sm:$0xff] %v393_v18  ;;  %v276_v19 = vpop.f32.mrf.mxu2 }
  0xb5   :  { %v325_v20 = vpop.f32.mrf.mxu3 }
  0xb6   :  { %v258_v21 = vpop.f32.mrf.mxu0 }
  0xb7   :  { %v307_v22 = vpop.f32.mrf.mxu1 }
  0xba   :  { %v395_v23 = vld [vmem:[#allocation2 + $0x10] sm:$0xff] }
  0xbb   :  { %396 = vst [vmem:[%s765_s3 + $0x10] sm:$0xff] %v395_v23 }
  0xbc   :  { %v278_v24 = vpop.f32.mrf.mxu2 }
  0xbd   :  { %v327_v25 = vpop.f32.mrf.mxu3 }
  0xbe   :  { %v261_v26 = vpop.f32.mrf.mxu0 }
  0xbf   :  { %v310_v27 = vpop.f32.mrf.mxu1 }
  0xc4   :  { %v281_v28 = vpop.f32.mrf.mxu2 }
  0xc5   :  { %v330_v29 = vpop.f32.mrf.mxu3 }
  0xc6   :  { %v263_v30 = vpop.f32.mrf.mxu0 }
  0xc7   :  { %v312_v31 = vpop.f32.mrf.mxu1 }
  0xcc   :  { %v283_v32 = vpop.f32.mrf.mxu2 }
  0xcd   :  { %v332_v33 = vpop.f32.mrf.mxu3 }
  0xce   :  { %v266_v34 = vpop.f32.mrf.mxu0 }
  0xcf   :  { %v315_v35 = vpop.f32.mrf.mxu1 }
  0xd4   :  { %v286_v36 = vpop.f32.mrf.mxu2 }
  0xd5   :  { %v335_v37 = vpop.f32.mrf.mxu3 }
  0xd6   :  { %v268_v38 = vpop.f32.mrf.mxu0 }
  0xd7   :  { %v317_v39 = vpop.f32.mrf.mxu1 }
  0xdc   :  { %v288_v40 = vpop.f32.mrf.mxu2 }
  0xdd   :  { %v337_v41 = vpop.f32.mrf.mxu3 }

</bundles_post_ra>
